<compile_context>
chip_gen: v7x
topology: tpu7x:2x2x1
jax: 0.10.0
libtpu: 0.0.40
codegen_flags: <defaults>
</compile_context>

<pallas_src>
import functools

import jax
import jax.numpy as jnp
from jax import lax
from jax.experimental import pallas as pl
from jax.experimental.pallas import tpu as pltpu

EPS = 1e-5


def _pick_tile(dim, target, align):
    """Largest multiple of `align` <= target that divides dim, else the full dim."""
    if dim <= target:
        return dim
    t = (target // align) * align
    while t >= align:
        if dim % t == 0:
            return t
        t -= align
    return dim


def _sigmoid(x):
    # EUP-friendly sigmoid: exp + approx reciprocal (both off the VALU slots).
    return pl.reciprocal(1.0 + jnp.exp(-x), approx=True)


# ----------------------------- tiled matmul (bf16 MXU) ------------------------

def _matmul_kernel(x_ref, w_ref, o_ref, acc_ref):
    @pl.when(pl.program_id(2) == 0)
    def _():
        acc_ref[...] = jnp.zeros_like(acc_ref)

    acc_ref[...] += jnp.dot(x_ref[...].astype(jnp.bfloat16), w_ref[...],
                            preferred_element_type=jnp.float32)

    @pl.when(pl.program_id(2) == pl.num_programs(2) - 1)
    def _():
        o_ref[...] = acc_ref[...]


def matmul(x, w):
    """x: (M, K) f32, w: (K, N) bf16 -> (M, N) f32."""
    M, K = x.shape
    N = w.shape[1]
    tm = _pick_tile(M, 256, 8)
    tn = _pick_tile(N, 256, 128)
    tk = _pick_tile(K, 512, 128)
    return pl.pallas_call(
        _matmul_kernel,
        out_shape=jax.ShapeDtypeStruct((M, N), jnp.float32),
        grid=(M // tm, N // tn, K // tk),
        in_specs=[pl.BlockSpec((tm, tk), lambda i, j, k: (i, k)),
                  pl.BlockSpec((tk, tn), lambda i, j, k: (k, j))],
        out_specs=pl.BlockSpec((tm, tn), lambda i, j, k: (i, j)),
        scratch_shapes=[pltpu.VMEM((tm, tn), jnp.float32)],
        compiler_params=pltpu.CompilerParams(
            dimension_semantics=("parallel", "parallel", "arbitrary")),
    )(x, w)


# ------------------ fused (residual add + RMSNorm) -> matmul -------------------

def _norm_matmul_kernel(x_ref, r_ref, g_ref, w_ref, o_ref, nr_ref, *, eps):
    x = x_ref[...] + r_ref[...]

    @pl.when(pl.program_id(1) == 0)
    def _():
        nr_ref[...] = x                                      # new residual

    xn = x * lax.rsqrt(jnp.mean(x * x, axis=-1, keepdims=True) + eps) * g_ref[...]
    o_ref[...] = jnp.dot(xn.astype(jnp.bfloat16), w_ref[...],
                         preferred_element_type=jnp.float32)


def norm_matmul(x, res, gamma, w, eps=EPS):
    """out = rmsnorm(x + res) @ w ; also returns new residual (x + res)."""
    M, K = x.shape
    N = w.shape[1]
    tm = _pick_tile(M, 256, 8)
    tn = _pick_tile(N, 256, 128)
    return pl.pallas_call(
        functools.partial(_norm_matmul_kernel, eps=eps),
        out_shape=(jax.ShapeDtypeStruct((M, N), jnp.float32),
                   jax.ShapeDtypeStruct((M, K), jnp.float32)),
        grid=(M // tm, N // tn),
        in_specs=[pl.BlockSpec((tm, K), lambda i, j: (i, 0)),
                  pl.BlockSpec((tm, K), lambda i, j: (i, 0)),
                  pl.BlockSpec((1, K), lambda i, j: (0, 0)),
                  pl.BlockSpec((K, tn), lambda i, j: (0, j))],
        out_specs=(pl.BlockSpec((tm, tn), lambda i, j: (i, j)),
                   pl.BlockSpec((tm, K), lambda i, j: (i, 0))),
        compiler_params=pltpu.CompilerParams(
            dimension_semantics=("parallel", "arbitrary")),
    )(x, res, gamma, w)


# ----------------------------- residual add + RMSNorm --------------------------

def _add_rmsnorm_kernel(x_ref, r_ref, g_ref, o_ref, nr_ref, *, eps):
    x = x_ref[...] + r_ref[...]
    nr_ref[...] = x
    o_ref[...] = x * lax.rsqrt(jnp.mean(x * x, axis=-1, keepdims=True) + eps) * g_ref[...]


def add_rmsnorm(x, res, gamma, eps=EPS):
    M, K = x.shape
    tm = _pick_tile(M, 512, 8)
    return pl.pallas_call(
        functools.partial(_add_rmsnorm_kernel, eps=eps),
        out_shape=(jax.ShapeDtypeStruct((M, K), jnp.float32),
                   jax.ShapeDtypeStruct((M, K), jnp.float32)),
        grid=(M // tm,),
        in_specs=[pl.BlockSpec((tm, K), lambda i: (i, 0)),
                  pl.BlockSpec((tm, K), lambda i: (i, 0)),
                  pl.BlockSpec((1, K), lambda i: (0, 0))],
        out_specs=(pl.BlockSpec((tm, K), lambda i: (i, 0)),
                   pl.BlockSpec((tm, K), lambda i: (i, 0))),
        compiler_params=pltpu.CompilerParams(dimension_semantics=("parallel",)),
    )(x, res, gamma)


# ----------------------------- flash attention (causal, GQA) -------------------

def _flash_kernel(q_ref, k_ref, v_ref, o_ref, m_sc, l_sc, acc_sc, *, scale, tq, tk):
    qi = pl.program_id(1)
    ki = pl.program_id(2)

    @pl.when(ki == 0)
    def _():
        m_sc[...] = jnp.full_like(m_sc, -1e30)
        l_sc[...] = jnp.zeros_like(l_sc)
        acc_sc[...] = jnp.zeros_like(acc_sc)

    @pl.when(ki * tk < (qi + 1) * tq)            # skip fully-masked causal tiles
    def _():
        q = q_ref[0].astype(jnp.bfloat16)        # (tq, Dh)
        k = k_ref[0].astype(jnp.bfloat16)        # (tk, Dh)
        v = v_ref[0].astype(jnp.bfloat16)
        s = lax.dot_general(q, k, (((1,), (1,)), ((), ())),
                            preferred_element_type=jnp.float32) * scale
        row = qi * tq + lax.broadcasted_iota(jnp.int32, (tq, tk), 0)
        col = ki * tk + lax.broadcasted_iota(jnp.int32, (tq, tk), 1)
        s = jnp.where(col <= row, s, -1e30)
        m_prev = m_sc[...]
        m_new = jnp.maximum(m_prev, jnp.max(s, axis=-1, keepdims=True))
        alpha = jnp.exp(m_prev - m_new)
        p = jnp.exp(s - m_new)
        l_sc[...] = alpha * l_sc[...] + jnp.sum(p, axis=-1, keepdims=True)
        acc_sc[...] = alpha * acc_sc[...] + jnp.dot(p.astype(jnp.bfloat16), v,
                                                    preferred_element_type=jnp.float32)
        m_sc[...] = m_new

    @pl.when(ki == pl.num_programs(2) - 1)
    def _():
        o_ref[0] = acc_sc[...] * pl.reciprocal(l_sc[...], approx=True)


def flash_attention(q, k, v, scale):
    """q: (H, S, Dh); k, v: (KV, S, Dh). GQA via index_map (no K/V replication)."""
    H, S, Dh = q.shape
    KV = k.shape[0]
    rep = H // KV
    tq = _pick_tile(S, 128, 8)
    tk = _pick_tile(S, 128, 8)
    return pl.pallas_call(
        functools.partial(_flash_kernel, scale=scale, tq=tq, tk=tk),
        out_shape=jax.ShapeDtypeStruct((H, S, Dh), jnp.float32),
        grid=(H, S // tq, S // tk),
        in_specs=[pl.BlockSpec((1, tq, Dh), lambda h, qi, ki: (h, qi, 0)),
                  pl.BlockSpec((1, tk, Dh), lambda h, qi, ki: (h // rep, ki, 0)),
                  pl.BlockSpec((1, tk, Dh), lambda h, qi, ki: (h // rep, ki, 0))],
        out_specs=pl.BlockSpec((1, tq, Dh), lambda h, qi, ki: (h, qi, 0)),
        scratch_shapes=[pltpu.VMEM((tq, 1), jnp.float32),
                        pltpu.VMEM((tq, 1), jnp.float32),
                        pltpu.VMEM((tq, Dh), jnp.float32)],
        compiler_params=pltpu.CompilerParams(
            dimension_semantics=("parallel", "parallel", "arbitrary")),
    )(q, k, v)


# ----------------------- causal depthwise conv + silu (channel-tiled) ----------

def _conv_silu_kernel(x_ref, w_ref, b_ref, o_ref, *, K):
    x = x_ref[...]                                           # (S, cb)
    acc = x * w_ref[K - 1:K, :]                              # tap aligned with t
    row = lax.broadcasted_iota(jnp.int32, x.shape, 0)
    for s in range(1, K):
        shifted = pltpu.roll(x, shift=s, axis=0)             # x[t - s] (wrapped)
        shifted = jnp.where(row >= s, shifted, 0.0)          # in-kernel zero padding
        acc = acc + shifted * w_ref[K - 1 - s:K - s, :]
    y = acc + b_ref[...]
    o_ref[...] = y * _sigmoid(y)


def causal_conv_silu(x, w, b):
    S, C = x.shape
    K = w.shape[0]
    cb = _pick_tile(C, 512, 128)
    return pl.pallas_call(
        functools.partial(_conv_silu_kernel, K=K),
        out_shape=jax.ShapeDtypeStruct((S, C), jnp.float32),
        grid=(C // cb,),
        in_specs=[pl.BlockSpec((S, cb), lambda c: (0, c)),
                  pl.BlockSpec((K, cb), lambda c: (0, c)),
                  pl.BlockSpec((1, cb), lambda c: (0, c))],
        out_specs=pl.BlockSpec((S, cb), lambda c: (0, c)),
        compiler_params=pltpu.CompilerParams(dimension_semantics=("parallel",)),
    )(x, w, b)


# ------------- fused x_proj + (dt/B/C RMSNorm) + dt_proj ("ssm params") --------

def _ssm_params_kernel(x_ref, wdt_ref, wb_ref, wc_ref, gdt_ref, gb_ref, gc_ref,
                       dtw_ref, dt_ref, b_ref, c_ref, *, eps):
    xb = x_ref[...].astype(jnp.bfloat16)

    def rms(v, g):
        return v * lax.rsqrt(jnp.mean(v * v, axis=-1, keepdims=True) + eps) * g

    ts = rms(jnp.dot(xb, wdt_ref[...], preferred_element_type=jnp.float32), gdt_ref[...])
    b_ref[...] = rms(jnp.dot(xb, wb_ref[...], preferred_element_type=jnp.float32), gb_ref[...])
    c_ref[...] = rms(jnp.dot(xb, wc_ref[...], preferred_element_type=jnp.float32), gc_ref[...])
    dt_ref[...] = jnp.dot(ts.astype(jnp.bfloat16), dtw_ref[...],
                          preferred_element_type=jnp.float32)


def ssm_params(conv_out, w_dt, w_b, w_c, g_dt, g_b, g_c, dt_w, eps=EPS):
    S, Ci = conv_out.shape
    R = w_dt.shape[1]
    N = w_b.shape[1]
    tm = _pick_tile(S, 256, 8)
    return pl.pallas_call(
        functools.partial(_ssm_params_kernel, eps=eps),
        out_shape=(jax.ShapeDtypeStruct((S, Ci), jnp.float32),
                   jax.ShapeDtypeStruct((S, N), jnp.float32),
                   jax.ShapeDtypeStruct((S, N), jnp.float32)),
        grid=(S // tm,),
        in_specs=[pl.BlockSpec((tm, Ci), lambda i: (i, 0)),
                  pl.BlockSpec((Ci, R), lambda i: (0, 0)),
                  pl.BlockSpec((Ci, N), lambda i: (0, 0)),
                  pl.BlockSpec((Ci, N), lambda i: (0, 0)),
                  pl.BlockSpec((1, R), lambda i: (0, 0)),
                  pl.BlockSpec((1, N), lambda i: (0, 0)),
                  pl.BlockSpec((1, N), lambda i: (0, 0)),
                  pl.BlockSpec((R, Ci), lambda i: (0, 0))],
        out_specs=(pl.BlockSpec((tm, Ci), lambda i: (i, 0)),
                   pl.BlockSpec((tm, N), lambda i: (i, 0)),
                   pl.BlockSpec((tm, N), lambda i: (i, 0))),
        compiler_params=pltpu.CompilerParams(dimension_semantics=("parallel",)),
    )(conv_out, w_dt, w_b, w_c, g_dt, g_b, g_c, dt_w)


# ---------------- selective scan: channel-parallel, time-chunked ----------------

def _scan_kernel(u_ref, dt_ref, bt_ref, ct_ref, z_ref, a_ref, d_ref, dtb_ref,
                 y_ref, st_ref, *, chunk, s_true):
    t_idx = pl.program_id(1)

    @pl.when(t_idx == 0)
    def _():
        st_ref[...] = jnp.zeros_like(st_ref)

    A = a_ref[...]                               # (N, cb)
    Dv = d_ref[...]                              # (1, cb)
    dt_raw = dt_ref[...] + dtb_ref[...]          # (chunk, cb)
    # stable softplus; padded rows masked to 0 so dA = 1, dBu = 0 (state unchanged)
    sp = jnp.where(dt_raw > 20.0, dt_raw,
                   jnp.log(1.0 + jnp.exp(jnp.minimum(dt_raw, 20.0))))
    row = t_idx * chunk + lax.broadcasted_iota(jnp.int32, dt_raw.shape, 0)
    dt_sp = jnp.where(row < s_true, sp, 0.0)

    u_c = u_ref[...]                             # (chunk, cb)
    z_c = z_ref[...]                             # (chunk, cb)
    b_t = bt_ref[0]                              # (N, chunk)  (pre-transposed)
    c_t = ct_ref[0]                              # (N, chunk)
    dtu = dt_sp * u_c                            # (chunk, cb)

    st = st_ref[...]                             # (N, cb) running state (one load/chunk)
    ys = []
    for t in range(chunk):                       # static 8-step unroll
        dA_t = jnp.exp(dt_sp[t:t + 1, :] * A)                 # (N, cb)
        dBu_t = b_t[:, t:t + 1] * dtu[t:t + 1, :]             # (N, cb) outer product (VPU)
        st = dA_t * st + dBu_t
        ys.append(jnp.sum(c_t[:, t:t + 1] * st, axis=0, keepdims=True))   # (1, cb)
    st_ref[...] = st                             # one store per chunk

    y = jnp.concatenate(ys, axis=0) + Dv * u_c
    y_ref[...] = y * (z_c * _sigmoid(z_c))       # silu gate


def selective_scan(u, dt, B, C, z, A, D, dt_bias, chunk=8):
    S, Ci = u.shape
    N = A.shape[0]
    Sp = ((S + chunk - 1) // chunk) * chunk
    if Sp != S:
        pad = ((0, Sp - S), (0, 0))
        u, dt, z = jnp.pad(u, pad), jnp.pad(dt, pad), jnp.pad(z, pad)
        B, C = jnp.pad(B, pad), jnp.pad(C, pad)
    nchunks = Sp // chunk
    # pre-transpose B/C per chunk so the kernel never transposes: (nchunks, N, chunk)
    Bt = jnp.transpose(B.reshape(nchunks, chunk, N), (0, 2, 1))
    Ct = jnp.transpose(C.reshape(nchunks, chunk, N), (0, 2, 1))
    cb = _pick_tile(Ci, 512, 128)
    y, st = pl.pallas_call(
        functools.partial(_scan_kernel, chunk=chunk, s_true=S),
        out_shape=(jax.ShapeDtypeStruct((Sp, Ci), jnp.float32),
                   jax.ShapeDtypeStruct((N, Ci), jnp.float32)),
        grid=(Ci // cb, nchunks),
        in_specs=[pl.BlockSpec((chunk, cb), lambda c, t: (t, c)),
                  pl.BlockSpec((chunk, cb), lambda c, t: (t, c)),
                  pl.BlockSpec((1, N, chunk), lambda c, t: (t, 0, 0)),
                  pl.BlockSpec((1, N, chunk), lambda c, t: (t, 0, 0)),
                  pl.BlockSpec((chunk, cb), lambda c, t: (t, c)),
                  pl.BlockSpec((N, cb), lambda c, t: (0, c)),
                  pl.BlockSpec((1, cb), lambda c, t: (0, c)),
                  pl.BlockSpec((1, cb), lambda c, t: (0, c))],
        out_specs=(pl.BlockSpec((chunk, cb), lambda c, t: (t, c)),
                   pl.BlockSpec((N, cb), lambda c, t: (0, c))),
        compiler_params=pltpu.CompilerParams(
            dimension_semantics=("parallel", "arbitrary")),
    )(u, dt, Bt, Ct, z, A, D, dt_bias)
    return y[:S], st


# ---------------------------- fused MoE / MLP (SwiGLU) --------------------------

def _moe_kernel(x_ref, r_ref, w1_ref, w3_ref, w2_ref, o_ref, acc_ref):
    e = pl.program_id(1)

    @pl.when(e == 0)
    def _():
        acc_ref[...] = jnp.zeros_like(acc_ref)

    x = x_ref[...]
    xb = x.astype(jnp.bfloat16)
    # router softmax in-kernel (renormalize=False, all experts weighted)
    logits = jnp.dot(xb, r_ref[...], preferred_element_type=jnp.float32)    # (tm, E)
    m = jnp.max(logits, axis=-1, keepdims=True)
    ex = jnp.exp(logits - m)
    probs = ex * pl.reciprocal(jnp.sum(ex, axis=-1, keepdims=True), approx=True)
    col = lax.broadcasted_iota(jnp.int32, probs.shape, 1)
    w_e = jnp.sum(jnp.where(col == e, probs, 0.0), axis=-1, keepdims=True)  # (tm, 1)

    g = jnp.dot(xb, w1_ref[0], preferred_element_type=jnp.float32)
    u = jnp.dot(xb, w3_ref[0], preferred_element_type=jnp.float32)
    h = (g * _sigmoid(g)) * u
    eo = jnp.dot(h.astype(jnp.bfloat16), w2_ref[0], preferred_element_type=jnp.float32)
    acc_ref[...] += w_e * eo

    @pl.when(e == pl.num_programs(1) - 1)
    def _():
        o_ref[...] = acc_ref[...]


def moe_ffn(x, router_w, w1, w3, w2):
    S, hid = x.shape
    E, _, inter = w1.shape
    tm = _pick_tile(S, 256, 8)
    return pl.pallas_call(
        _moe_kernel,
        out_shape=jax.ShapeDtypeStruct((S, hid), jnp.float32),
        grid=(S // tm, E),
        in_specs=[pl.BlockSpec((tm, hid), lambda i, e: (i, 0)),
                  pl.BlockSpec((hid, E), lambda i, e: (0, 0)),
                  pl.BlockSpec((1, hid, inter), lambda i, e: (e, 0, 0)),
                  pl.BlockSpec((1, hid, inter), lambda i, e: (e, 0, 0)),
                  pl.BlockSpec((1, inter, hid), lambda i, e: (e, 0, 0))],
        out_specs=pl.BlockSpec((tm, hid), lambda i, e: (i, 0)),
        scratch_shapes=[pltpu.VMEM((tm, hid), jnp.float32)],
        compiler_params=pltpu.CompilerParams(
            dimension_semantics=("parallel", "arbitrary")),
    )(x, router_w, w1, w3, w2)


# ------------------------------- layer wrappers ---------------------------------

def attention_layer(h, res, lp, cfg):
    S = h.shape[0]
    H, KV, Dh = cfg['num_heads'], cfg['num_kv_heads'], cfg['head_dim']
    q_size, kv_size = H * Dh, KV * Dh
    qkv, res = norm_matmul(h, res, lp['input_ln'], lp['wqkv'])
    q = jnp.transpose(qkv[:, :q_size].reshape(S, H, Dh), (1, 0, 2))
    k = jnp.transpose(qkv[:, q_size:q_size + kv_size].reshape(S, KV, Dh), (1, 0, 2))
    v = jnp.transpose(qkv[:, q_size + kv_size:].reshape(S, KV, Dh), (1, 0, 2))
    o = flash_attention(q, k, v, Dh ** -0.5)
    # TODO(synk): fold the head transposes and o_proj into the attention kernel
    # epilogue for a lane-dense (S, H*Dh) store.
    o = jnp.transpose(o, (1, 0, 2)).reshape(S, H * Dh)
    attn_out = matmul(o, lp['wo'])
    return attn_out, res


def mamba_layer(h, res, lp, cfg):
    Ci, K = cfg['mamba_inter'], cfg['d_conv']
    S = h.shape[0]
    proj, res = norm_matmul(h, res, lp['input_ln'], lp['in_proj'])      # (S, 2Ci)
    hs, gate = proj[:, :Ci], proj[:, Ci:]
    conv_out = causal_conv_silu(hs, lp['conv_w'], lp['conv_b'])
    dt, B, C = ssm_params(conv_out, lp['xw_dt'], lp['xw_b'], lp['xw_c'],
                          lp['dt_ln'], lp['b_ln'], lp['c_ln'], lp['dt_w'])
    y, ssm_st = selective_scan(conv_out, dt, B, C, gate, lp['A'], lp['D'], lp['dt_b'])
    out = matmul(y, lp['out_proj'])
    # conv-state writeback: last K-1 pre-conv inputs, torch layout (Ci, K-1)
    if S >= K - 1:
        conv_st = jnp.transpose(hs[S - (K - 1):, :], (1, 0))
    else:
        conv_st = jnp.transpose(
            jnp.concatenate([jnp.zeros((K - 1 - S, Ci), hs.dtype), hs], axis=0), (1, 0))
    return out, res, conv_st, jnp.transpose(ssm_st, (1, 0))             # ssm: (Ci, N)


def jamba_forward(params, cfg, input_ids, positions, conv_state, ssm_state):
    # TODO(synk): vLLM decode branch (causal_conv1d_update / selective_state_update)
    # and paged KV-cache writeback are not modeled; this is the prefill path with
    # context_lens == 0 (zero initial conv/ssm state).
    del positions                                    # Jamba attention has no positional embedding
    h = params['embed'][input_ids]                   # embedding gather (plain-JAX glue)
    res = jnp.zeros_like(h)                          # residual=None case: new residual = h
    conv_list, ssm_list = [], []
    for i in range(cfg['num_layers']):
        lp = params['layers'][i]
        if cfg['layers_block_type'][i] == 'attention':
            core_out, res = attention_layer(h, res, lp, cfg)
        else:
            core_out, res, cs, ss = mamba_layer(h, res, lp, cfg)
            conv_list.append(cs)
            ssm_list.append(ss)
        ff_in, res = add_rmsnorm(core_out, res, lp['pre_ff_ln'])
        h = moe_ffn(ff_in, lp['router'], lp['w1'], lp['w3'], lp['w2'])
    out, _ = add_rmsnorm(h, res, params['final_ln'])
    new_conv = jnp.stack(conv_list) if conv_list else conv_state
    new_ssm = jnp.stack(ssm_list) if ssm_list else ssm_state
    return out, new_conv, new_ssm


# ------------------------------- parameter init ---------------------------------

def init_params(key, cfg):
    keys = iter(jax.random.split(key, 1024))
    bf = jnp.bfloat16

    def nrm(shape, scale=0.05, dtype=jnp.float32):
        return (scale * jax.random.normal(next(keys), shape, jnp.float32)).astype(dtype)

    hid = cfg['hidden_size']
    H, KV, Dh = cfg['num_heads'], cfg['num_kv_heads'], cfg['head_dim']
    Ci, N, R, K = cfg['mamba_inter'], cfg['d_state'], cfg['dt_rank'], cfg['d_conv']
    inter = cfg['ffn_inter']

    params = {
        'embed': nrm((cfg['vocab_size'], hid), 0.02),
        'final_ln': jnp.ones((1, hid), jnp.float32),
        'layers': [],
    }
    for i in range(cfg['num_layers']):
        lp = {
            'input_ln': jnp.ones((1, hid), jnp.float32),
            'pre_ff_ln': jnp.ones((1, hid), jnp.float32),
        }
        if cfg['layers_block_type'][i] == 'attention':
            lp['wqkv'] = nrm((hid, (H + 2 * KV) * Dh), dtype=bf)
            lp['wo'] = nrm((H * Dh, hid), dtype=bf)
        else:
            lp['in_proj'] = nrm((hid, 2 * Ci), dtype=bf)
            lp['conv_w'] = nrm((K, Ci), 0.2)
            lp['conv_b'] = nrm((1, Ci), 0.1)
            lp['xw_dt'] = nrm((Ci, R), dtype=bf)       # x_proj split per output segment
            lp['xw_b'] = nrm((Ci, N), dtype=bf)
            lp['xw_c'] = nrm((Ci, N), dtype=bf)
            lp['dt_w'] = nrm((R, Ci), dtype=bf)
            lp['dt_b'] = nrm((1, Ci), 0.1)
            lp['A'] = -jnp.exp(nrm((N, Ci), 0.5))      # A = -exp(A_log), stored (d_state, Ci)
            lp['D'] = jnp.ones((1, Ci), jnp.float32)
            lp['out_proj'] = nrm((Ci, hid), dtype=bf)
            lp['dt_ln'] = jnp.ones((1, R), jnp.float32)
            lp['b_ln'] = jnp.ones((1, N), jnp.float32)
            lp['c_ln'] = jnp.ones((1, N), jnp.float32)
        E = cfg['layers_num_experts'][i]
        lp['w1'] = nrm((E, hid, inter), dtype=bf)
        lp['w3'] = nrm((E, hid, inter), dtype=bf)
        lp['w2'] = nrm((E, inter, hid), dtype=bf)
        # E == 1 (JambaMLP): zero router -> softmax over a single logit == 1
        lp['router'] = nrm((hid, E), dtype=bf) if E > 1 else jnp.zeros((hid, 1), bf)
        params['layers'].append(lp)
    return params


# ------------------------------------ main ---------------------------------------

if __name__ == "__main__":
    cfg = dict(
        vocab_size=128,
        hidden_size=32,
        num_heads=4,
        num_kv_heads=2,
        head_dim=8,                 # hidden_size // num_attention_heads
        ffn_inter=64,               # config.intermediate_size
        mamba_inter=64,             # mamba_expand * hidden_size
        d_state=8,                  # mamba_d_state
        d_conv=4,                   # mamba_d_conv
        dt_rank=8,                  # mamba_dt_rank
        num_layers=4,
        layers_block_type=['mamba', 'attention', 'mamba', 'attention'],
        layers_num_experts=[1, 2, 1, 2],   # MLP / MoE(2 experts) alternation
        attn_layer_offset=1,
        attn_layer_period=2,
    )

    key = jax.random.PRNGKey(0)
    pkey, ikey = jax.random.split(key)
    params = init_params(pkey, cfg)

    S = 8
    input_ids = jax.random.randint(ikey, (S,), 0, cfg['vocab_size'], dtype=jnp.int32)
    positions = jnp.arange(S, dtype=jnp.int32)
    num_mamba = sum(1 for t in cfg['layers_block_type'] if t == 'mamba')
    conv_state = jnp.zeros((num_mamba, cfg['mamba_inter'], cfg['d_conv'] - 1), jnp.float32)
    ssm_state = jnp.zeros((num_mamba, cfg['mamba_inter'], cfg['d_state']), jnp.float32)

    out, new_conv, new_ssm = jamba_forward(params, cfg, input_ids, positions,
                                           conv_state, ssm_state)
    jax.block_until_ready((out, new_conv, new_ssm))
    assert out.shape == (S, cfg['hidden_size'])
    assert new_conv.shape == conv_state.shape
    assert new_ssm.shape == ssm_state.shape
    assert bool(jnp.all(jnp.isfinite(out)))
    print("KERNEL_OK")
</pallas_src>

<mosaic_0001>
module attributes {stable_mosaic.version = 11 : i64} {
  func.func @_norm_matmul_kernel(%arg0: i32, %arg1: i32, %arg2: memref<8x32xf32, #tpu.memory_space<vmem>>, %arg3: memref<8x32xf32, #tpu.memory_space<vmem>>, %arg4: memref<1x32xf32, #tpu.memory_space<vmem>>, %arg5: memref<32x128xbf16, #tpu.memory_space<vmem>>, %arg6: memref<8x128xf32, #tpu.memory_space<vmem>>, %arg7: memref<8x32xf32, #tpu.memory_space<vmem>>) attributes {dimension_semantics = [#tpu.dimension_semantics<parallel>, #tpu.dimension_semantics<arbitrary>], iteration_bounds = array<i64: 1, 1>, scalar_prefetch = 0 : i64, scratch_operands = 0 : i64, tpu.core_type = #tpu.core_type<tc>, window_params = [{transform_indices = @transform_0, window_bounds = array<i64: 8, 32>}, {transform_indices = @transform_1, window_bounds = array<i64: 8, 32>}, {pipeline_mode = #tpu.pipeline_mode<synchronous>, transform_indices = @transform_2, window_bounds = array<i64: 1, 32>}, {transform_indices = @transform_3, window_bounds = array<i64: 32, 128>}, {transform_indices = @transform_4, window_bounds = array<i64: 8, 128>}, {transform_indices = @transform_5, window_bounds = array<i64: 8, 32>}]} {
    %c0 = arith.constant 0 : index
    %c0_0 = arith.constant 0 : index
    %0 = vector.load %arg2[%c0, %c0_0] : memref<8x32xf32, #tpu.memory_space<vmem>>, vector<8x32xf32>
    %c0_1 = arith.constant 0 : index
    %c0_2 = arith.constant 0 : index
    %1 = vector.load %arg3[%c0_1, %c0_2] : memref<8x32xf32, #tpu.memory_space<vmem>>, vector<8x32xf32>
    %2 = arith.addf %0, %1 : vector<8x32xf32>
    %c0_i32 = arith.constant 0 : i32
    %3 = arith.cmpi eq, %arg1, %c0_i32 : i32
    %4 = arith.extui %3 : i1 to i32
    %c0_i32_3 = arith.constant 0 : i32
    %5 = arith.cmpi ne, %4, %c0_i32_3 : i32
    scf.if %5 {
      %c0_13 = arith.constant 0 : index
      %c0_14 = arith.constant 0 : index
      %23 = vector.load %arg7[%c0_13, %c0_14] : memref<8x32xf32, #tpu.memory_space<vmem>>, vector<8x32xf32>
      tpu.vector_store %arg7[%c0_13, %c0_14], %2 {strides = array<i32>} : memref<8x32xf32, #tpu.memory_space<vmem>>, vector<8x32xf32>,
    } else {
    }
    %6 = arith.mulf %2, %2 : vector<8x32xf32>
    %cst = arith.constant dense<0.000000e+00> : vector<8xf32>
    %7 = vector.multi_reduction <add>, %6, %cst [1] : vector<8x32xf32> to vector<8xf32>
    %8 = vector.shape_cast %7 : vector<8xf32> to vector<8x1xf32>
    %cst_4 = arith.constant 3.200000e+01 : f32
    %9 = vector.broadcast %cst_4 : f32 to vector<8x1xf32>
    %10 = arith.divf %8, %9 : vector<8x1xf32>
    %cst_5 = arith.constant 9.99999974E-6 : f32
    %11 = vector.broadcast %cst_5 : f32 to vector<8x1xf32>
    %12 = arith.addf %10, %11 : vector<8x1xf32>
    %13 = math.rsqrt %12 : vector<8x1xf32>
    %14 = vector.broadcast %13 : vector<8x1xf32> to vector<8x32xf32>
    %15 = arith.mulf %2, %14 : vector<8x32xf32>
    %c0_6 = arith.constant 0 : index
    %c0_7 = arith.constant 0 : index
    %16 = vector.load %arg4[%c0_6, %c0_7] : memref<1x32xf32, #tpu.memory_space<vmem>>, vector<1x32xf32>
    %17 = vector.broadcast %16 : vector<1x32xf32> to vector<8x32xf32>
    %18 = arith.mulf %15, %17 : vector<8x32xf32>
    %19 = arith.truncf %18 : vector<8x32xf32> to vector<8x32xbf16>
    %c0_8 = arith.constant 0 : index
    %c0_9 = arith.constant 0 : index
    %20 = vector.load %arg5[%c0_8, %c0_9] : memref<32x128xbf16, #tpu.memory_space<vmem>>, vector<32x128xbf16>
    %cst_10 = arith.constant dense<0.000000e+00> : vector<8x128xf32>
    %21 = tpu.matmul %19, %20, %cst_10 {dimension_numbers = #tpu.dot_dimension_numbers<[1], [0], [0], [1], [0, 0, 1, 1], [], []>} : vector<8x32xbf16>, vector<32x128xbf16>, vector<8x128xf32> -> vector<8x128xf32>
    %c0_11 = arith.constant 0 : index
    %c0_12 = arith.constant 0 : index
    %22 = vector.load %arg6[%c0_11, %c0_12] : memref<8x128xf32, #tpu.memory_space<vmem>>, vector<8x128xf32>
    tpu.vector_store %arg6[%c0_11, %c0_12], %21 {strides = array<i32>} : memref<8x128xf32, #tpu.memory_space<vmem>>, vector<8x128xf32>,
    return
  }
  func.func @transform_0(%arg0: i32, %arg1: i32) -> (i32, i32) {
    %c0_i32 = arith.constant 0 : i32
    %c0_i32_0 = arith.constant 0 : i32
    return %arg0, %c0_i32 : i32, i32
  }
  func.func @transform_1(%arg0: i32, %arg1: i32) -> (i32, i32) {
    %c0_i32 = arith.constant 0 : i32
    %c0_i32_0 = arith.constant 0 : i32
    return %arg0, %c0_i32 : i32, i32
  }
  func.func @transform_2(%arg0: i32, %arg1: i32) -> (i32, i32) {
    %c0_i32 = arith.constant 0 : i32
    %c0_i32_0 = arith.constant 0 : i32
    %c0_i32_1 = arith.constant 0 : i32
    return %c0_i32, %c0_i32_0 : i32, i32
  }
  func.func @transform_3(%arg0: i32, %arg1: i32) -> (i32, i32) {
    %c0_i32 = arith.constant 0 : i32
    %c0_i32_0 = arith.constant 0 : i32
    return %c0_i32, %arg1 : i32, i32
  }
  func.func @transform_4(%arg0: i32, %arg1: i32) -> (i32, i32) {
    %c0_i32 = arith.constant 0 : i32
    return %arg0, %arg1 : i32, i32
  }
  func.func @transform_5(%arg0: i32, %arg1: i32) -> (i32, i32) {
    %c0_i32 = arith.constant 0 : i32
    %c0_i32_0 = arith.constant 0 : i32
    return %arg0, %c0_i32 : i32, i32
  }
}

</mosaic_0001>

<bundles_post_ra>
// kernel: tpu_custom_call.1
= control target key start
LH: loop header
LB: loop body
LE: loop exit
PB: predicated region body
PF: predicated region fallthrough
CT: control target
= control target key end

     0   :  { %11 = vsyncpa [#allocation3], 0  ;;  %s428_s0 = inlined_call_operand.hbm [shape: f32[8,32], index: 0, kind: input, shape index: {}]   ;;  %s429_s1 = inlined_call_operand.hbm [shape: f32[8,32], index: 1, kind: input, shape index: {}]   ;;  %s430_s2 = inlined_call_operand.vmem [shape: f32[1,32], index: 2, kind: input, shape index: {}]   ;;  %s431_s3 = inlined_call_operand.hbm [shape: bf16[32,128], index: 3, kind: input, shape index: {}]   ;;  %s432_s4 = inlined_call_operand.hbm [shape: f32[8,128], index: 4, kind: output, shape index: {0}]   ;;  %s433_s5 = inlined_call_operand.hbm [shape: f32[8,32], index: 5, kind: output, shape index: {1}]  }
   0x1   :  { %12 = vsyncpa [#allocation6], 0 }
   0x2   :  { %13 = vsyncpa [#allocation4], 0 }
   0x3   :  { %14 = vsyncpa [#allocation10], 0  ;;  %s323_s18 = smov [#allocation5]   ;;  %s324_s20 = smov [#allocation2]  }
   0x4   :  { %s31_s19 = sshll.u32 %s323_s18, 4  ;;  %s21_s21 = sshll.u32 %s324_s20, 4  ;;  %s32_s19 = int_to_ptr.vmem [resolvable:$true] %s31_s19  ;;  %s22_s21 = int_to_ptr.vmem [resolvable:$true] %s21_s21 }
   0x5   :  { %s205_s24 = scalar_lea.hbm %s429_s1, 128 }
   0x6   :  { %p206_p0 = scmp.ne.s32.totalorder %s429_s1, %s205_s24  ;;  %p209_p1 = scmp.lt.u32.totalorder %s205_s24, %s429_s1 }
   0x8   :  { %p211_p2 = pnand %p209_p1, %p206_p0 }
   0xa   :  { %214 = shalt.err (!%p211_p2)
}
   0xb   :  { %s215_s29 = scalar_lea.vmem %s32_s19, 128  ;;  %p220_p4 = scmp.lt.s32.totalorder %s32_s19, %s32_s19 }
   0xc   :  { %p216_p3 = scmp.ne.s32.totalorder %s32_s19, %s215_s29  ;;  %p221_p5 = scmp.lt.s32.totalorder %s215_s29, %s215_s29 }
   0xe   :  { %p222_p6 = por %p221_p5, %p220_p4 }
  0x10   :  { %p223_p7 = pnand %p222_p6, %p216_p3 }
  0x12   :  { %226 = shalt.err (!%p223_p7)
}
  0x13   :  { %34 = dma.hbm_to_vmem [thread:$0]  %s429_s1, 128, %s32_s19, [#allocation6]  }
  0x14   :  { %s227_s9 = scalar_lea.hbm %s428_s0, 128 }
  0x15   :  { %p228_p8 = scmp.ne.s32.totalorder %s428_s0, %s227_s9  ;;  %p231_p9 = scmp.lt.u32.totalorder %s227_s9, %s428_s0 }
  0x17   :  { %p233_p10 = pnand %p231_p9, %p228_p8 }
  0x19   :  { %236 = shalt.err (!%p233_p10)
}
  0x1a   :  { %s237_s14 = scalar_lea.vmem %s22_s21, 128  ;;  %p242_p12 = scmp.lt.s32.totalorder %s22_s21, %s22_s21 }
  0x1b   :  { %p238_p11 = scmp.ne.s32.totalorder %s22_s21, %s237_s14  ;;  %p243_p13 = scmp.lt.s32.totalorder %s237_s14, %s237_s14 }
  0x1d   :  { %p244_p0 = por %p243_p13, %p242_p12 }
  0x1f   :  { %p245_p1 = pnand %p244_p0, %p238_p11 }
  0x21   :  { %248 = shalt.err (!%p245_p1)
}
  0x22   :  { %24 = dma.hbm_to_vmem [thread:$0]  %s428_s0, 128, %s22_s21, [#allocation3]  }
  0x23   :  { %s325_s16 = smov [#allocation7]   ;;  %s249_s20 = scalar_lea.hbm %s431_s3, 256 }
  0x24   :  { %s42_s17 = sshll.u32 %s325_s16, 4  ;;  %p250_p2 = scmp.ne.s32.totalorder %s431_s3, %s249_s20  ;;  %s43_s17 = int_to_ptr.vmem [resolvable:$true] %s42_s17 }
  0x25   :  { %p253_p3 = scmp.lt.u32.totalorder %s249_s20, %s431_s3 }
  0x27   :  { %p255_p4 = pnand %p253_p3, %p250_p2 }
  0x29   :  { %258 = shalt.err (!%p255_p4)
}
  0x2a   :  { %s259_s26 = scalar_lea.vmem %s43_s17, 256  ;;  %p264_p6 = scmp.lt.s32.totalorder %s43_s17, %s43_s17 }
  0x2b   :  { %p260_p5 = scmp.ne.s32.totalorder %s43_s17, %s259_s26  ;;  %p265_p7 = scmp.lt.s32.totalorder %s259_s26, %s259_s26 }
  0x2d   :  { %p266_p8 = por %p265_p7, %p264_p6 }
  0x2f   :  { %p267_p9 = pnand %p266_p8, %p260_p5 }
  0x31   :  { %270 = shalt.err (!%p267_p9)
}
  0x32   :  { %s326_s0 = smov 64   ;;  %s327_s21 = smov 4  }
  0x33   :  { %48 = dma.hbm_to_vmem [thread:$0]  %s431_s3, 256, %s43_s17, [#allocation6], %s326_s0, %s326_s0, %s327_s21  }
  0x34   :  { %315 = dma.done.wait [#allocation3], 128  }
  0x35   :  { %316 = vsyncadd [#allocation3], 4294967168 }
  0x36   :  { %317 = dma.done.wait [#allocation6], 384  }
  0x37   :  { %318 = vsyncadd [#allocation6], 4294966912  ;;  %v59_v0 = vld [vmem:[#allocation2] sm:$0xff]  ;;  %v60_v1 = vld [vmem:[#allocation5] sm:$0xff]  ;;  %vm66_vm0 = vcmask 261120   ;;  %v328_v6 = vmov 0.0  }
  0x38   :  { %v61_v2 = vadd.f32 %v60_v1, %v59_v0  ;;  %v201_v5 = vld [vmem:[#allocation7] sm:$0xff]   ;;  %184 = vmatprep.subr.bf16.mxu0 %v328_v6  ;;  %vm329_vm1 = vmmov 0   ;;  %v202_v7 = vld [vmem:[#allocation7 + $0x8] sm:$0xff]   ;;  %v177_v12 = vld [vmem:[%s430_s2] ss:$0 sm:$0xff]  ;;  %s330_s30 = smov [#allocation9]  }
  0x39   :  { %188 = vmatprep.mubr.msk.bf16.mxu0 %vm329_vm1, %v328_v6  ;;  %185 = vmatpush3.bf16.msra.mxu0 %v201_v5  ;;  %s163_s6 = sshll.u32 %s330_s30, 4  ;;  %s164_s6 = int_to_ptr.vmem [resolvable:$true] %s163_s6 }
  0x3a   :  { %v68_v3 = vmul.f32 %v61_v2, %v61_v2  ;;  %67 = vst.msk [vmem:[#allocation9] sm:$0xff] %vm66_vm0, %v61_v2  ;;  %186 = vmatprep.subr.bf16.mxu0 %v328_v6  ;;  %s271_s7 = scalar_lea.vmem %s164_s6, 128  ;;  %p276_p11 = scmp.lt.s32.totalorder %s164_s6, %s164_s6 }
  0x3b   :  { %p272_p10 = scmp.ne.s32.totalorder %s164_s6, %s271_s7  ;;  %p277_p12 = scmp.lt.s32.totalorder %s271_s7, %s271_s7 }
  0x3c   :  { %v70_v4 = vsel %vm66_vm0, %v68_v3, 0.0 }
  0x3d   :  { %71 = vadd.xlane.f32.xlu0 %v70_v4  ;;  %187 = vmatpush3.bf16.msra.mxu0 %v202_v7  ;;  %p278_p13 = por %p277_p12, %p276_p11 }
  0x3f   :  { %p279_p0 = pnand %p278_p13, %p272_p10 }
  0xca   :  { %v72_v8 = vpop.xlane.xlu0 %71 }
  0xcb   :  { %v74_v9 = vmul.f32 0.03125, %v72_v8 }
  0xcd   :  { %v75_v10 = vadd.f32 1e-05, %v74_v9 }
  0xcf   :  { %203 = vrsqrt.f32 %v75_v10 }
  0xd9   :  { %v204_v11 = vpop.eup %203 }
  0xda   :  { %v77_v13 = vmul.f32 %v204_v11, %v61_v2 }
  0xdc   :  { %v85_v14 = vmul.f32 %v177_v12, %v77_v13 }
  0xde   :  { %v86_v15 = vpack.c.bf16 %v85_v14, %v85_v14 }
  0xe0   :  { %189 = vmatmul.mubr.msk.bf16.vlgmr.msra.gmra.mrb[0].mxu0 %vm66_vm0, %v86_v15 }
  0xe1   :  { %282 = shalt.err (!%p279_p0)
}
  0xe2   :  { %s283_s10 = scalar_lea.hbm %s433_s5, 128 }
  0xe3   :  { %p284_p1 = scmp.ne.s32.totalorder %s433_s5, %s283_s10  ;;  %p287_p2 = scmp.lt.u32.totalorder %s283_s10, %s433_s5 }
  0xe5   :  { %p289_p3 = pnand %p287_p2, %p284_p1 }
  0xe7   :  { %292 = shalt.err (!%p289_p3)
}
  0xe8   :  { %166 = dma.vmem_to_hbm [thread:$0]  %s164_s6, 128, %s433_s5, [#allocation10]  }
  0xe9   :  { %s331_s15 = smov [#allocation8]  }
  0xea   :  { %s153_s16 = sshll.u32 %s331_s15, 4  ;;  %s154_s16 = int_to_ptr.vmem [resolvable:$true] %s153_s16 }
  0xeb   :  { %s293_s17 = scalar_lea.vmem %s154_s16, 128  ;;  %p298_p5 = scmp.lt.s32.totalorder %s154_s16, %s154_s16 }
  0xec   :  { %p294_p4 = scmp.ne.s32.totalorder %s154_s16, %s293_s17  ;;  %p299_p6 = scmp.lt.s32.totalorder %s293_s17, %s293_s17 }
  0xee   :  { %p300_p7 = por %p299_p6, %p298_p5 }
  0xf0   :  { %p301_p8 = pnand %p300_p7, %p294_p4 }
 0x1b3   :  { %v140_v16 = vpop.f32.mrb[0].mxu0 }
 0x1b4   :  { %146 = vst [vmem:[#allocation8] sm:$0xff] %v140_v16  ;;  %v190_v17 = vpop.f32.mrb[1].mxu0 }
 0x1b5   :  { %v143_v18 = vpop.f32.mrb[2].mxu0 }
 0x1b6   :  { %304 = shalt.err (!%p301_p8)
}
 0x1b7   :  { %s305_s20 = scalar_lea.hbm %s432_s4, 128 }
 0x1b8   :  { %p306_p9 = scmp.ne.s32.totalorder %s432_s4, %s305_s20  ;;  %p309_p10 = scmp.lt.u32.totalorder %s305_s20, %s432_s4 }
 0x1ba   :  { %p311_p11 = pnand %p309_p10, %p306_p9 }
 0x1bc   :  { %314 = shalt.err (!%p311_p11)
}
 0x1bd   :  { %156 = dma.vmem_to_hbm [thread:$0]  %s154_s16, 128, %s432_s4, [#allocation4]   ;;  %v191_v19 = vpop.f32.mrb[3].mxu0 }
 0x1be   :  { %319 = dma.done.wait [#allocation4], 128  }
 0x1bf   :  { %320 = vsyncadd [#allocation4], 4294967168 }
 0x1c0   :  { %321 = dma.done.wait [#allocation10], 128  }
 0x1c1   :  { %322 = vsyncadd [#allocation10], 4294967168 }
 0x1c2   :  { %173 = vsyncpa [#allocation3], 1 }
 0x1c3   :  { %174 = vsyncpa [#allocation6], 1 }
 0x1c4   :  { %175 = vsyncpa [#allocation4], 1 }
 0x1c5   :  { %176 = vsyncpa [#allocation10], 1 }

</bundles_post_ra>
